<compile_context>
chip_gen: v5e
topology: v5e:2x2
jax: 0.10.0
libtpu: 0.0.40
codegen_flags: <defaults>
</compile_context>

<pallas_src>
import jax
import jax.numpy as jnp
from jax.experimental import pallas as pl
from jax.experimental.pallas import tpu as pltpu

LANE = 128
SUB_BF16 = 16  # bf16 vreg packs [16, 128]; batch tiles rounded to this


def _round_up(x, m):
    return ((x + m - 1) // m) * m


def _cdiv(a, b):
    return (a + b - 1) // b


def _chip_defaults():
    """Per-generation tiling defaults (batch tile cap, minimum grid steps)."""
    try:
        kind = jax.devices()[0].device_kind.lower()
    except Exception:
        kind = ""
    if "v7" in kind:
        # 64 MiB VMEM per TC, 2 TCs -> smaller tiles, but >=2 grid steps so the
        # "parallel" batch axis shards across both cores.
        return {"tb_max": 256, "min_tiles": 2}
    if "v6" in kind or "v5" in kind:
        # 128 MiB VMEM, single TC -> bigger tiles for better HBM utilization.
        return {"tb_max": 512, "min_tiles": 1}
    return {"tb_max": 256, "min_tiles": 1}


def _resident_spec(shape):
    """Grid-resident (constant index_map) BlockSpec, single-buffered."""
    try:
        return pl.BlockSpec(shape, lambda i: (0, 0), pipeline_mode=pl.Buffered(1))
    except TypeError:  # pipeline_mode unavailable in this jax version
        return pl.BlockSpec(shape, lambda i: (0, 0))


# ----------------------------------------------------------------------------
# Pallas kernel: fused head  out = relu(d @ W1 + b1) @ W2 + b2
# d / w1 / w2 arrive as bf16 (MXU-native), biases as f32; both dots accumulate
# in f32. All trailing dims are pre-padded to multiples of 128 (lane-dense).
# ----------------------------------------------------------------------------
def head_kernel(d_ref, w1_ref, b1_ref, w2_ref, b2_ref, o_ref):
    h = jnp.dot(d_ref[...], w1_ref[...], preferred_element_type=jnp.float32)
    h = jnp.maximum(h + b1_ref[...], 0.0)                        # (TB, H_pad) f32
    o = jnp.dot(h.astype(jnp.bfloat16), w2_ref[...],
                preferred_element_type=jnp.float32)
    o_ref[...] = (o + b2_ref[...]).astype(o_ref.dtype)           # (TB, O_pad) bf16


# ----------------------------------------------------------------------------
# One-time preparation of the (frozen) head weights: pad to lane-dense shapes
# and cast to bf16.  Hoisted out of the per-forward path.
# ----------------------------------------------------------------------------
def prepare_head_params(w1, b1, w2, b2):
    F, H = w1.shape
    n_out = w2.shape[1]
    F_pad = _round_up(max(F, LANE), LANE)
    H_pad = _round_up(max(H, LANE), LANE)
    O_pad = LANE  # lane-dense output; real columns sliced off in the wrapper

    def pad2(a, r, c):
        return jnp.pad(a, ((0, r - a.shape[0]), (0, c - a.shape[1])))

    return {
        "w1": pad2(w1, F_pad, H_pad).astype(jnp.bfloat16),
        "b1": pad2(b1.reshape(1, -1).astype(jnp.float32), 1, H_pad),
        "w2": pad2(w2, H_pad, O_pad).astype(jnp.bfloat16),
        "b2": pad2(b2.reshape(1, -1).astype(jnp.float32), 1, O_pad),
        "F": F, "H": H, "n_out": n_out,
        "F_pad": F_pad, "H_pad": H_pad, "O_pad": O_pad,
    }


# ----------------------------------------------------------------------------
# Fused head wrapper.  d: (B, F) f32 = |f1 - f2| (difference taken in f32).
# ----------------------------------------------------------------------------
def turtle_diff_head(d, head, *, tb_max=None, min_tiles=None):
    B, F = d.shape
    assert F == head["F"]
    F_pad, H_pad, O_pad = head["F_pad"], head["H_pad"], head["O_pad"]
    n_out = head["n_out"]

    defaults = _chip_defaults()
    tb_max = tb_max if tb_max is not None else defaults["tb_max"]
    min_tiles = min_tiles if min_tiles is not None else defaults["min_tiles"]

    # Batch tiling: waste < one tile; TB a multiple of 16 (bf16 sublanes);
    # on 2-TC chips force >=2 grid steps when the batch is big enough.
    n_tiles = max(_cdiv(B, tb_max), 1)
    if n_tiles < min_tiles and B >= min_tiles * SUB_BF16:
        n_tiles = min_tiles
    TB = _round_up(_cdiv(B, n_tiles), SUB_BF16)
    B_pad = TB * n_tiles

    # Pad in f32, cast once to bf16 (padding is mathematically inert: zero
    # rows/cols contribute 0 through both matmuls).
    d_pad = jnp.pad(d, ((0, B_pad - B), (0, F_pad - F))).astype(jnp.bfloat16)

    # Explicit VMEM budget: double-buffered activation tiles, single-buffered
    # resident weights, plus the f32 intermediate and some headroom.
    vmem_bytes = (2 * TB * F_pad * 2          # d tile, double-buffered bf16
                  + F_pad * H_pad * 2         # w1 (resident, single buffer)
                  + H_pad * 4                 # b1
                  + H_pad * O_pad * 2         # w2
                  + O_pad * 4                 # b2
                  + 2 * TB * O_pad * 2        # out tile, double-buffered bf16
                  + TB * H_pad * 4)           # hidden intermediate (f32)
    vmem_limit = min(int(vmem_bytes * 1.5) + (4 << 20), 48 << 20)

    # Cost estimate with real (unpadded) dims.
    flops = 2 * B * (F * head["H"] + head["H"] * n_out)
    bytes_accessed = (B * F * 2 + F * head["H"] * 2 + head["H"] * 4
                      + head["H"] * n_out * 2 + n_out * 4 + B * n_out * 2)

    out = pl.pallas_call(
        head_kernel,
        out_shape=jax.ShapeDtypeStruct((B_pad, O_pad), jnp.bfloat16),
        grid=(n_tiles,),
        in_specs=[
            pl.BlockSpec((TB, F_pad), lambda i: (i, 0)),   # d tile (streamed)
            _resident_spec((F_pad, H_pad)),                # w1 (resident)
            _resident_spec((1, H_pad)),                    # b1 (resident)
            _resident_spec((H_pad, O_pad)),                # w2 (resident)
            _resident_spec((1, O_pad)),                    # b2 (resident)
        ],
        out_specs=pl.BlockSpec((TB, O_pad), lambda i: (i, 0)),
        compiler_params=pltpu.CompilerParams(
            dimension_semantics=("parallel",),
            vmem_limit_bytes=vmem_limit),
        cost_estimate=pl.CostEstimate(
            flops=flops, transcendentals=0, bytes_accessed=bytes_accessed),
    )(d_pad, head["w1"], head["b1"], head["w2"], head["b2"])

    return out[:B, :n_out].astype(jnp.float32)


# ----------------------------------------------------------------------------
# Synthetic frozen backbone stand-in (plain JAX glue): conv3x3 + ReLU + GAP
# ----------------------------------------------------------------------------
def backbone_stub(x, conv_w, conv_b):
    # x: (B, H, W, Cin) NHWC ; conv_w: (3, 3, Cin, F) HWIO ; conv_b: (F,)
    y = jax.lax.conv_general_dilated(
        x, conv_w, window_strides=(1, 1), padding="SAME",
        dimension_numbers=("NHWC", "HWIO", "NHWC"))
    y = jax.nn.relu(y + conv_b)
    return jnp.mean(y, axis=(1, 2))  # global average pool -> (B, F) f32


# ----------------------------------------------------------------------------
# Full TurtleDiff forward
# ----------------------------------------------------------------------------
def turtle_diff_forward(x1, x2, params, head):
    B = x1.shape[0]
    # Single backbone pass over concat([x1, x2]) (one conv of batch 2B).
    feats = backbone_stub(jnp.concatenate([x1, x2], axis=0),
                          params["conv_w"], params["conv_b"])
    # |f1 - f2| in f32 (before any bf16 cast) to preserve small differences.
    d = jnp.abs(feats[:B] - feats[B:])
    return turtle_diff_head(d, head)


def init_params(key, c_in, num_features, hidden, n_out=2):
    k = jax.random.split(key, 6)
    scale = 0.05
    return {
        "conv_w": scale * jax.random.normal(k[0], (3, 3, c_in, num_features), jnp.float32),
        "conv_b": scale * jax.random.normal(k[1], (num_features,), jnp.float32),
        # fc: (num_features -> hidden), stored as (F, H)  (PyTorch keeps (H, F))
        "w1": scale * jax.random.normal(k[2], (num_features, hidden), jnp.float32),
        "b1": scale * jax.random.normal(k[3], (hidden,), jnp.float32),
        # fc2: (hidden -> 2), stored as (H, 2)
        "w2": scale * jax.random.normal(k[4], (hidden, n_out), jnp.float32),
        "b2": scale * jax.random.normal(k[5], (n_out,), jnp.float32),
    }


if __name__ == "__main__":
    B, Hs, Ws, Cin = 2, 16, 16, 4
    num_features, hidden = 32, 100   # hidden=100 matches the module default

    key = jax.random.PRNGKey(0)
    kx1, kx2, kp = jax.random.split(key, 3)
    x1 = jax.random.normal(kx1, (B, Hs, Ws, Cin), jnp.float32)
    x2 = jax.random.normal(kx2, (B, Hs, Ws, Cin), jnp.float32)
    params = init_params(kp, Cin, num_features, hidden)

    # One-time head preparation (frozen head: pad + bf16 cast hoisted here).
    head = prepare_head_params(params["w1"], params["b1"],
                               params["w2"], params["b2"])

    out = turtle_diff_forward(x1, x2, params, head)
    out = jax.block_until_ready(out)

    # Pure-JAX f32 reference of the head (loose tolerance for the bf16 MXU path).
    f1 = backbone_stub(x1, params["conv_w"], params["conv_b"])
    f2 = backbone_stub(x2, params["conv_w"], params["conv_b"])
    d = jnp.abs(f1 - f2)
    ref = (jnp.maximum(d @ params["w1"] + params["b1"], 0.0)
           @ params["w2"] + params["b2"])

    assert out.shape == (B, 2)
    assert jnp.allclose(out, ref, atol=1e-2, rtol=1e-2), (out, ref)

    print("KERNEL_OK")
</pallas_src>

<mosaic_0001>
module attributes {stable_mosaic.version = 11 : i64} {
  func.func @head_kernel(%arg0: i32, %arg1: memref<16x128xbf16, #tpu.memory_space<vmem>>, %arg2: memref<128x128xbf16, #tpu.memory_space<vmem>>, %arg3: memref<1x128xf32, #tpu.memory_space<vmem>>, %arg4: memref<128x128xbf16, #tpu.memory_space<vmem>>, %arg5: memref<1x128xf32, #tpu.memory_space<vmem>>, %arg6: memref<16x128xbf16, #tpu.memory_space<vmem>>) attributes {dimension_semantics = [#tpu.dimension_semantics<parallel>], iteration_bounds = array<i64: 1>, scalar_prefetch = 0 : i64, scratch_operands = 0 : i64, tpu.core_type = #tpu.core_type<tc>, window_params = [{transform_indices = @transform_0, window_bounds = array<i64: 16, 128>}, {pipeline_mode = #tpu.pipeline_mode<synchronous>, transform_indices = @transform_1, window_bounds = array<i64: 128, 128>}, {pipeline_mode = #tpu.pipeline_mode<synchronous>, transform_indices = @transform_2, window_bounds = array<i64: 1, 128>}, {pipeline_mode = #tpu.pipeline_mode<synchronous>, transform_indices = @transform_3, window_bounds = array<i64: 128, 128>}, {pipeline_mode = #tpu.pipeline_mode<synchronous>, transform_indices = @transform_4, window_bounds = array<i64: 1, 128>}, {transform_indices = @transform_5, window_bounds = array<i64: 16, 128>}]} {
    %c0 = arith.constant 0 : index
    %c0_0 = arith.constant 0 : index
    %0 = vector.load %arg1[%c0, %c0_0] : memref<16x128xbf16, #tpu.memory_space<vmem>>, vector<16x128xbf16>
    %c0_1 = arith.constant 0 : index
    %c0_2 = arith.constant 0 : index
    %1 = vector.load %arg2[%c0_1, %c0_2] : memref<128x128xbf16, #tpu.memory_space<vmem>>, vector<128x128xbf16>
    %cst = arith.constant dense<0.000000e+00> : vector<16x128xf32>
    %2 = tpu.matmul %0, %1, %cst {dimension_numbers = #tpu.dot_dimension_numbers<[1], [0], [0], [1], [0, 0, 1, 1], [], []>} : vector<16x128xbf16>, vector<128x128xbf16>, vector<16x128xf32> -> vector<16x128xf32>
    %c0_3 = arith.constant 0 : index
    %c0_4 = arith.constant 0 : index
    %3 = vector.load %arg3[%c0_3, %c0_4] : memref<1x128xf32, #tpu.memory_space<vmem>>, vector<1x128xf32>
    %4 = vector.broadcast %3 : vector<1x128xf32> to vector<16x128xf32>
    %5 = arith.addf %2, %4 : vector<16x128xf32>
    %cst_5 = arith.constant 0.000000e+00 : f32
    %6 = vector.broadcast %cst_5 : f32 to vector<16x128xf32>
    %7 = arith.maximumf %5, %6 : vector<16x128xf32>
    %8 = arith.truncf %7 : vector<16x128xf32> to vector<16x128xbf16>
    %c0_6 = arith.constant 0 : index
    %c0_7 = arith.constant 0 : index
    %9 = vector.load %arg4[%c0_6, %c0_7] : memref<128x128xbf16, #tpu.memory_space<vmem>>, vector<128x128xbf16>
    %cst_8 = arith.constant dense<0.000000e+00> : vector<16x128xf32>
    %10 = tpu.matmul %8, %9, %cst_8 {dimension_numbers = #tpu.dot_dimension_numbers<[1], [0], [0], [1], [0, 0, 1, 1], [], []>} : vector<16x128xbf16>, vector<128x128xbf16>, vector<16x128xf32> -> vector<16x128xf32>
    %c0_9 = arith.constant 0 : index
    %c0_10 = arith.constant 0 : index
    %11 = vector.load %arg5[%c0_9, %c0_10] : memref<1x128xf32, #tpu.memory_space<vmem>>, vector<1x128xf32>
    %12 = vector.broadcast %11 : vector<1x128xf32> to vector<16x128xf32>
    %13 = arith.addf %10, %12 : vector<16x128xf32>
    %14 = arith.truncf %13 : vector<16x128xf32> to vector<16x128xbf16>
    %c0_11 = arith.constant 0 : index
    %c0_12 = arith.constant 0 : index
    %15 = vector.load %arg6[%c0_11, %c0_12] : memref<16x128xbf16, #tpu.memory_space<vmem>>, vector<16x128xbf16>
    tpu.vector_store %arg6[%c0_11, %c0_12], %14 {strides = array<i32>} : memref<16x128xbf16, #tpu.memory_space<vmem>>, vector<16x128xbf16>,
    return
  }
  func.func @transform_0(%arg0: i32) -> (i32, i32) {
    %c0_i32 = arith.constant 0 : i32
    %c0_i32_0 = arith.constant 0 : i32
    return %arg0, %c0_i32 : i32, i32
  }
  func.func @transform_1(%arg0: i32) -> (i32, i32) {
    %c0_i32 = arith.constant 0 : i32
    %c0_i32_0 = arith.constant 0 : i32
    %c0_i32_1 = arith.constant 0 : i32
    return %c0_i32, %c0_i32_0 : i32, i32
  }
  func.func @transform_2(%arg0: i32) -> (i32, i32) {
    %c0_i32 = arith.constant 0 : i32
    %c0_i32_0 = arith.constant 0 : i32
    %c0_i32_1 = arith.constant 0 : i32
    return %c0_i32, %c0_i32_0 : i32, i32
  }
  func.func @transform_3(%arg0: i32) -> (i32, i32) {
    %c0_i32 = arith.constant 0 : i32
    %c0_i32_0 = arith.constant 0 : i32
    %c0_i32_1 = arith.constant 0 : i32
    return %c0_i32, %c0_i32_0 : i32, i32
  }
  func.func @transform_4(%arg0: i32) -> (i32, i32) {
    %c0_i32 = arith.constant 0 : i32
    %c0_i32_0 = arith.constant 0 : i32
    %c0_i32_1 = arith.constant 0 : i32
    return %c0_i32, %c0_i32_0 : i32, i32
  }
  func.func @transform_5(%arg0: i32) -> (i32, i32) {
    %c0_i32 = arith.constant 0 : i32
    %c0_i32_0 = arith.constant 0 : i32
    return %arg0, %c0_i32 : i32, i32
  }
}

</mosaic_0001>

<bundles_post_ra>
// kernel: tpu_custom_call.1
= control target key start
LH: loop header
LB: loop body
LE: loop exit
PB: predicated region body
PF: predicated region fallthrough
CT: control target
= control target key end

     0   :  { %10 = vsyncpa [#allocation3], 0  ;;  %s533_s0 = inlined_call_operand.hbm [shape: bf16[16,128], index: 0, kind: input, shape index: {}]   ;;  %s534_s1 = inlined_call_operand.hbm [shape: bf16[128,128], index: 1, kind: input, shape index: {}]   ;;  %s535_s2 = inlined_call_operand.vmem [shape: f32[1,128], index: 2, kind: input, shape index: {}]   ;;  %s536_s3 = inlined_call_operand.hbm [shape: bf16[128,128], index: 3, kind: input, shape index: {}]   ;;  %s537_s4 = inlined_call_operand.vmem [shape: f32[1,128], index: 4, kind: input, shape index: {}]   ;;  %s538_s5 = inlined_call_operand.hbm [shape: bf16[16,128], index: 5, kind: output, shape index: {}]  }
   0x1   :  { %11 = vsyncpa [#allocation6], 0 }
   0x2   :  { %12 = vsyncpa [#allocation4], 0  ;;  %s30_s20 = sshll.u32 %s534_s1, 4  ;;  %s467_s21 = smov [#allocation5]   ;;  %s31_s20 = int_to_ptr.hbm [resolvable:$true] %s30_s20 }
   0x3   :  { %s32_s22 = sshll.u32 %s467_s21, 4  ;;  %s17_s25 = sshll.u32 %s533_s0, 4  ;;  %s33_s22 = int_to_ptr.vmem [resolvable:$true] %s32_s22  ;;  %s18_s25 = int_to_ptr.hbm [resolvable:$true] %s17_s25 }
   0x4   :  { %s468_s26 = smov 64   ;;  %s469_s27 = smov 4  }
   0x5   :  { %38 = dma.hbm_to_vmem [thread:$0]  %s31_s20, 1024, %s33_s22, [#allocation6], %s468_s26, %s468_s26, %s469_s27  }
   0x6   :  { %s470_s28 = smov [#allocation2]   ;;  %s45_s1 = sshll.u32 %s536_s3, 4  ;;  %s46_s1 = int_to_ptr.hbm [resolvable:$true] %s45_s1 }
   0x7   :  { %s19_s29 = sshll.u32 %s470_s28, 4  ;;  %s471_s0 = smov [#allocation7]   ;;  %s20_s29 = int_to_ptr.vmem [resolvable:$true] %s19_s29 }
   0x8   :  { %25 = dma.hbm_to_vmem [thread:$0]  %s18_s25, 128, %s20_s29, [#allocation3], %s468_s26, %s468_s26, %s469_s27  }
   0x9   :  { %s47_s7 = sshll.u32 %s471_s0, 4  ;;  %s48_s7 = int_to_ptr.vmem [resolvable:$true] %s47_s7 }
   0xa   :  { %53 = dma.hbm_to_vmem [thread:$0]  %s46_s1, 1024, %s48_s7, [#allocation6], %s468_s26, %s468_s26, %s469_s27  }
   0xb   :  { %461 = dma.done.wait [#allocation3], 128  }
   0xc   :  { %462 = vsyncadd [#allocation3], 4294967168 }
   0xd   :  { %463 = dma.done.wait [#allocation6], 2048  }
   0xe   :  { %464 = vsyncadd [#allocation6], 4294965248  ;;  %v343_v0 = vld [vmem:[#allocation5 + $0x38] sm:$0xff]  ;;  %v342_v1 = vld [vmem:[#allocation5 + $0x30] sm:$0xff]  ;;  %s472_s11 = smov [#allocation8]   ;;  %s253_s15 = sshll.u32 %s538_s5, 4  ;;  %s254_s15 = int_to_ptr.hbm [resolvable:$true] %s253_s15 }
   0xf   :  { %144 = vmatpush.bf16.msra.mxu0 %v343_v0  ;;  %v351_v2 = vld [vmem:[#allocation7 + $0x38] sm:$0xff]  ;;  %v350_v3 = vld [vmem:[#allocation7 + $0x30] sm:$0xff]  ;;  %v341_v4 = vld [vmem:[#allocation5 + $0x28] sm:$0xff]  ;;  %s251_s12 = sshll.u32 %s472_s11, 4  ;;  %s252_s12 = int_to_ptr.vmem [resolvable:$true] %s251_s12 }
  0x10   :  { %229 = vmatpush.bf16.msra.mxu1 %v351_v2  ;;  %v349_v5 = vld [vmem:[#allocation7 + $0x28] sm:$0xff]  ;;  %v340_v6 = vld [vmem:[#allocation5 + $0x20] sm:$0xff]  ;;  %v339_v8 = vld [vmem:[#allocation5 + $0x18] sm:$0xff] }
  0x11   :  { %v348_v7 = vld [vmem:[#allocation7 + $0x20] sm:$0xff]  ;;  %v338_v9 = vld [vmem:[#allocation5 + $0x10] sm:$0xff]  ;;  %v337_v10 = vld [vmem:[#allocation5 + $0x8] sm:$0xff] }
  0x12   :  { %v336_v11 = vld [vmem:[#allocation5] sm:$0xff]  ;;  %v335_v12 = vld [vmem:[#allocation2] sm:$0xff]  ;;  %v346_v14 = vld [vmem:[#allocation7 + $0x10] sm:$0xff] }
  0x13   :  { %145 = vmatpush.bf16.msra.mxu0 %v342_v1  ;;  %v347_v13 = vld [vmem:[#allocation7 + $0x18] sm:$0xff]  ;;  %v345_v15 = vld [vmem:[#allocation7 + $0x8] sm:$0xff]  ;;  %v344_v16 = vld [vmem:[#allocation7] sm:$0xff] }
  0x14   :  { %230 = vmatpush.bf16.msra.mxu1 %v350_v3  ;;  %v363_v18 = vld [vmem:[%s535_s2] ss:$0 sm:$0xff] }
  0x15   :  { %v364_v26 = vld [vmem:[%s537_s4] ss:$0 sm:$0xff] }
  0x17   :  { %146 = vmatpush.bf16.msra.mxu0 %v341_v4 }
  0x18   :  { %231 = vmatpush.bf16.msra.mxu1 %v349_v5 }
  0x1b   :  { %147 = vmatpush.bf16.msra.mxu0 %v340_v6 }
  0x1c   :  { %232 = vmatpush.bf16.msra.mxu1 %v348_v7 }
  0x1f   :  { %148 = vmatpush.bf16.msra.mxu0 %v339_v8 }
  0x20   :  { %233 = vmatpush.bf16.msra.mxu1 %v347_v13 }
  0x23   :  { %149 = vmatpush.bf16.msra.mxu0 %v338_v9 }
  0x24   :  { %234 = vmatpush.bf16.msra.mxu1 %v346_v14 }
  0x27   :  { %150 = vmatpush.bf16.msra.mxu0 %v337_v10 }
  0x28   :  { %235 = vmatpush.bf16.msra.mxu1 %v345_v15 }
  0x2b   :  { %151 = vmatpush.bf16.msra.mxu0 %v336_v11 }
  0x2c   :  { %236 = vmatpush.bf16.msra.mxu1 %v344_v16 }
  0x2e   :  { %152 = vmatmul.bf16.vlgmr.msra.gmra.mxu0 %v335_v12 }
  0xab   :  { %v153_v17 = vpop.f32.mrf.mxu0 }
  0xac   :  { %v154_v19 = vadd.f32 %v363_v18, %v153_v17 }
  0xae   :  { %v158_v22 = vmax.f32 %v154_v19, 0.0 }
  0xb3   :  { %v155_v20 = vpop.f32.mrf.mxu0 }
  0xb4   :  { %v156_v21 = vadd.f32 %v363_v18, %v155_v20 }
  0xb6   :  { %v159_v23 = vmax.f32 %v156_v21, 0.0 }
  0xb8   :  { %v160_v24 = vpack.c.bf16 %v159_v23, %v158_v22 }
  0xba   :  { %237 = vmatmul.bf16.vlgmr.msra.gmra.mxu1 %v160_v24 }
 0x137   :  { %v238_v25 = vpop.f32.mrf.mxu1 }
 0x138   :  { %v239_v28 = vadd.f32 %v364_v26, %v238_v25 }
 0x13f   :  { %v240_v27 = vpop.f32.mrf.mxu1 }
 0x140   :  { %v241_v29 = vadd.f32 %v364_v26, %v240_v27 }
 0x142   :  { %v355_v30 = vpack.c.bf16 %v241_v29, %v239_v28 }
 0x144   :  { %356 = vst [vmem:[#allocation8] sm:$0xff] %v355_v30  }
 0x145   :  { %259 = dma.vmem_to_hbm [thread:$0]  %s252_s12, 128, %s254_s15, [#allocation4], %s468_s26, %s468_s26, %s469_s27  }
 0x146   :  { %465 = dma.done.wait [#allocation4], 128  }
 0x147   :  { %466 = vsyncadd [#allocation4], 4294967168 }
 0x148   :  { %264 = vsyncpa [#allocation3], 1 }
 0x149   :  { %265 = vsyncpa [#allocation6], 1 }
 0x14a   :  { %266 = vsyncpa [#allocation4], 1 }

</bundles_post_ra>
